<compile_context>
chip_gen: v7x
topology: tpu7x:2x2x1
jax: 0.10.0
libtpu: 0.0.40
codegen_flags: <defaults>
</compile_context>

<pallas_src>
import functools

import numpy as np
import jax
import jax.numpy as jnp
from jax.experimental import pallas as pl
from jax.experimental.pallas import tpu as pltpu


def _reorg_perm(H, W, s, dtype):
    """0/1 permutation matrix G (H*W, s*s*Ho*Wo): (x_flat @ G)[c, k*Ho*Wo + ho*Wo + wo]
    == x[c, ho*s + h2, wo*s + w2] with k = h2*s + w2."""
    Ho, Wo = H // s, W // s
    q = np.arange(s * s * Ho * Wo)
    k, r = q // (Ho * Wo), q % (Ho * Wo)
    h2, w2 = k // s, k % s
    ho, wo = r // Wo, r % Wo
    src = (ho * s + h2) * W + (wo * s + w2)
    g = np.zeros((H * W, s * s * Ho * Wo), dtype=np.float32)
    g[src, q] = 1.0
    return jnp.asarray(g, dtype=dtype)


def _choose_c_block(C, H, W, itemsize, budget_bytes=24 << 20):
    """Largest channel block that keeps double-buffered in/out blocks, the f32
    matmul result and the resident permutation matrix under the VMEM budget.
    Block must be a multiple of 8 (sublane tiling) or the full C."""
    hw = H * W
    g_bytes = 2 * hw * hw * itemsize              # resident permutation matrix (conservative x2)
    per_c = hw * (4 * itemsize + 4)               # 2x in block + 2x out block + f32 result
    cap = int(max(1, (budget_bytes - g_bytes) // per_c))
    if C <= cap:
        return C
    best, d = 0, 8
    while d <= min(C, cap):
        if C % d == 0:
            best = d
        d += 8
    return best if best else C                    # fallback: full C (rely on vmem limit)


def _reorg_kernel(x_ref, g_ref, o_ref, *, s2, hw_out):
    # x_ref: (1, C_BLK, H*W)   g_ref: (H*W, s2*Ho*Wo)   o_ref: (1, s2, C_BLK, Ho*Wo)
    # Single fused MXU permutation matmul in the input's native dtype (exact).
    y = jnp.dot(x_ref[0], g_ref[...], preferred_element_type=jnp.float32)
    y = y.astype(o_ref.dtype)
    for k in range(s2):  # s2 static lane slices -> wide (C_BLK, Ho*Wo) stores
        o_ref[0, k, :, :] = y[:, k * hw_out:(k + 1) * hw_out]


def reorg(x, stride=2):
    """ReorgLayer.forward equivalent. x: (B, C, H, W) -> (B, s*s*C, H/s, W/s)."""
    B, C, H, W = x.shape
    s = stride
    assert H % s == 0 and W % s == 0
    # MXU permutation path is exact for float dtypes only (see review notes).
    assert jnp.issubdtype(x.dtype, jnp.floating), "reorg: float feature maps expected"
    Ho, Wo = H // s, W // s
    s2 = s * s
    hw, hw_out = H * W, Ho * Wo

    c_blk = _choose_c_block(C, H, W, jnp.dtype(x.dtype).itemsize)
    assert C % c_blk == 0
    n_cb = C // c_blk

    g = _reorg_perm(H, W, s, x.dtype)     # resident in VMEM (constant block index)
    x_flat = x.reshape(B, C, hw)          # contiguous reshape: free

    kernel = functools.partial(_reorg_kernel, s2=s2, hw_out=hw_out)

    out5 = pl.pallas_call(
        kernel,
        out_shape=jax.ShapeDtypeStruct((B, s2, C, hw_out), x.dtype),
        grid_spec=pltpu.PrefetchScalarGridSpec(
            num_scalar_prefetch=0,
            grid=(B, n_cb),
            in_specs=[
                pl.BlockSpec((1, c_blk, hw), lambda b, cb: (b, cb, 0)),
                pl.BlockSpec((hw, hw), lambda b, cb: (0, 0)),   # permutation matrix, resident
            ],
            out_specs=pl.BlockSpec(
                (1, s2, c_blk, hw_out), lambda b, cb: (b, 0, cb, 0)
            ),
        ),
        compiler_params=pltpu.CompilerParams(
            dimension_semantics=("parallel", "parallel"),
            vmem_limit_bytes=32 * 1024 * 1024,   # safe on v7x (64 MiB VMEM) and v5e/v6e
        ),
    )(x_flat, g)

    # Contiguous reshape: channel index becomes (h2*s + w2) * C + c, matching
    # the PyTorch view/transpose chain exactly.
    return out5.reshape(B, s2 * C, Ho, Wo)


if __name__ == "__main__":
    key = jax.random.PRNGKey(0)
    B, C, H, W = 2, 4, 16, 16
    stride = 2
    x = jax.random.normal(key, (B, C, H, W), dtype=jnp.float32)

    out = jax.block_until_ready(reorg(x, stride=stride))

    # Pure-JAX reference reproducing the PyTorch view/transpose semantics.
    s = stride
    ref = (
        x.reshape(B, C, H // s, s, W // s, s)
        .transpose(0, 3, 5, 1, 2, 4)
        .reshape(B, s * s * C, H // s, W // s)
    )

    assert out.shape == ref.shape, (out.shape, ref.shape)
    assert out.dtype == ref.dtype
    assert jnp.allclose(out, ref), "Pallas reorg does not match reference"
    print("KERNEL_OK")
</pallas_src>

<mosaic_0001>
module attributes {stable_mosaic.version = 11 : i64} {
  func.func @_reorg_kernel(%arg0: i32, %arg1: i32, %arg2: memref<1x4x256xf32, #tpu.memory_space<vmem>>, %arg3: memref<256x256xf32, #tpu.memory_space<vmem>>, %arg4: memref<1x4x4x64xf32, #tpu.memory_space<vmem>>) attributes {dimension_semantics = [#tpu.dimension_semantics<parallel>, #tpu.dimension_semantics<parallel>], iteration_bounds = array<i64: 2, 1>, scalar_prefetch = 0 : i64, scratch_operands = 0 : i64, tpu.core_type = #tpu.core_type<tc>, window_params = [{transform_indices = @transform_0, window_bounds = array<i64: 1, 4, 256>}, {pipeline_mode = #tpu.pipeline_mode<synchronous>, transform_indices = @transform_1, window_bounds = array<i64: 256, 256>}, {transform_indices = @transform_2, window_bounds = array<i64: 1, 4, 4, 64>}]} {
    %c0 = arith.constant 0 : index
    %c0_0 = arith.constant 0 : index
    %c0_1 = arith.constant 0 : index
    %0 = vector.load %arg2[%c0, %c0_0, %c0_1] : memref<1x4x256xf32, #tpu.memory_space<vmem>>, vector<1x4x256xf32>
    %1 = vector.shape_cast %0 : vector<1x4x256xf32> to vector<4x256xf32>
    %c0_2 = arith.constant 0 : index
    %c0_3 = arith.constant 0 : index
    %2 = vector.load %arg3[%c0_2, %c0_3] : memref<256x256xf32, #tpu.memory_space<vmem>>, vector<256x256xf32>
    %cst = arith.constant dense<0.000000e+00> : vector<4x256xf32>
    %3 = tpu.matmul %1, %2, %cst {dimension_numbers = #tpu.dot_dimension_numbers<[1], [0], [0], [1], [0, 0, 1, 1], [], []>} : vector<4x256xf32>, vector<256x256xf32>, vector<4x256xf32> -> vector<4x256xf32>
    %4 = vector.extract_strided_slice %3 {offsets = [0, 0], sizes = [4, 64], strides = [1, 1]} : vector<4x256xf32> to vector<4x64xf32>
    %c0_4 = arith.constant 0 : index
    %c0_5 = arith.constant 0 : index
    %c0_6 = arith.constant 0 : index
    %c0_7 = arith.constant 0 : index
    %5 = vector.load %arg4[%c0_4, %c0_5, %c0_6, %c0_7] : memref<1x4x4x64xf32, #tpu.memory_space<vmem>>, vector<1x1x4x64xf32>
    %6 = vector.shape_cast %5 : vector<1x1x4x64xf32> to vector<4x64xf32>
    %7 = vector.shape_cast %4 : vector<4x64xf32> to vector<1x1x4x64xf32>
    tpu.vector_store %arg4[%c0_4, %c0_5, %c0_6, %c0_7], %7 {strides = array<i32>} : memref<1x4x4x64xf32, #tpu.memory_space<vmem>>, vector<1x1x4x64xf32>,
    %8 = vector.extract_strided_slice %3 {offsets = [0, 64], sizes = [4, 64], strides = [1, 1]} : vector<4x256xf32> to vector<4x64xf32>
    %c0_8 = arith.constant 0 : index
    %c1 = arith.constant 1 : index
    %c0_9 = arith.constant 0 : index
    %c0_10 = arith.constant 0 : index
    %9 = vector.load %arg4[%c0_8, %c1, %c0_9, %c0_10] : memref<1x4x4x64xf32, #tpu.memory_space<vmem>>, vector<1x1x4x64xf32>
    %10 = vector.shape_cast %9 : vector<1x1x4x64xf32> to vector<4x64xf32>
    %11 = vector.shape_cast %8 : vector<4x64xf32> to vector<1x1x4x64xf32>
    tpu.vector_store %arg4[%c0_8, %c1, %c0_9, %c0_10], %11 {strides = array<i32>} : memref<1x4x4x64xf32, #tpu.memory_space<vmem>>, vector<1x1x4x64xf32>,
    %12 = vector.extract_strided_slice %3 {offsets = [0, 128], sizes = [4, 64], strides = [1, 1]} : vector<4x256xf32> to vector<4x64xf32>
    %c0_11 = arith.constant 0 : index
    %c2 = arith.constant 2 : index
    %c0_12 = arith.constant 0 : index
    %c0_13 = arith.constant 0 : index
    %13 = vector.load %arg4[%c0_11, %c2, %c0_12, %c0_13] : memref<1x4x4x64xf32, #tpu.memory_space<vmem>>, vector<1x1x4x64xf32>
    %14 = vector.shape_cast %13 : vector<1x1x4x64xf32> to vector<4x64xf32>
    %15 = vector.shape_cast %12 : vector<4x64xf32> to vector<1x1x4x64xf32>
    tpu.vector_store %arg4[%c0_11, %c2, %c0_12, %c0_13], %15 {strides = array<i32>} : memref<1x4x4x64xf32, #tpu.memory_space<vmem>>, vector<1x1x4x64xf32>,
    %16 = vector.extract_strided_slice %3 {offsets = [0, 192], sizes = [4, 64], strides = [1, 1]} : vector<4x256xf32> to vector<4x64xf32>
    %c0_14 = arith.constant 0 : index
    %c3 = arith.constant 3 : index
    %c0_15 = arith.constant 0 : index
    %c0_16 = arith.constant 0 : index
    %17 = vector.load %arg4[%c0_14, %c3, %c0_15, %c0_16] : memref<1x4x4x64xf32, #tpu.memory_space<vmem>>, vector<1x1x4x64xf32>
    %18 = vector.shape_cast %17 : vector<1x1x4x64xf32> to vector<4x64xf32>
    %19 = vector.shape_cast %16 : vector<4x64xf32> to vector<1x1x4x64xf32>
    tpu.vector_store %arg4[%c0_14, %c3, %c0_15, %c0_16], %19 {strides = array<i32>} : memref<1x4x4x64xf32, #tpu.memory_space<vmem>>, vector<1x1x4x64xf32>,
    return
  }
  func.func @transform_0(%arg0: i32, %arg1: i32) -> (i32, i32, i32) {
    %c0_i32 = arith.constant 0 : i32
    %c0_i32_0 = arith.constant 0 : i32
    return %arg0, %arg1, %c0_i32 : i32, i32, i32
  }
  func.func @transform_1(%arg0: i32, %arg1: i32) -> (i32, i32) {
    %c0_i32 = arith.constant 0 : i32
    %c0_i32_0 = arith.constant 0 : i32
    %c0_i32_1 = arith.constant 0 : i32
    return %c0_i32, %c0_i32_0 : i32, i32
  }
  func.func @transform_2(%arg0: i32, %arg1: i32) -> (i32, i32, i32, i32) {
    %c0_i32 = arith.constant 0 : i32
    %c0_i32_0 = arith.constant 0 : i32
    %c0_i32_1 = arith.constant 0 : i32
    return %arg0, %c0_i32, %arg1, %c0_i32_0 : i32, i32, i32, i32
  }
}

</mosaic_0001>

<bundles_post_ra>
// kernel: tpu_custom_call.1
= control target key start
LH: loop header
LB: loop body
LE: loop exit
PB: predicated region body
PF: predicated region fallthrough
CT: control target
= control target key end

     0   :  { %7 = vsyncpa [#allocation3], 0  ;;  %s1024_s0 = inlined_call_operand.hbm [shape: f32[2,4,256], index: 0, kind: input, shape index: {}]   ;;  %s1025_s1 = inlined_call_operand.hbm [shape: f32[256,256], index: 1, kind: input, shape index: {}]   ;;  %s1026_s2 = inlined_call_operand.hbm [shape: f32[2,4,4,64], index: 2, kind: output, shape index: {}]  }
   0x1   :  { %9 = vsyncpa [#allocation3 + $0x1], 0 }
   0x2   :  { %10 = vsyncpa [#allocation6], 0 }
   0x3   :  { %11 = vsyncpa [#allocation4], 0 }
   0x4   :  { %13 = vsyncpa [#allocation4 + $0x1], 0  ;;  %s791_s9 = smov 0   ;;  %s793_s10 = smov 0  }
   0x5   :  { %s795_s11 = smov 0   ;;  %s797_s12 = smov 0  }
   0x6   :  { %s799_s13 = smov 0   ;;  %s801_s14 = smov 0  }
   0x7 LB: > { %s459_s15 = sadd.s32 4294967295, %s767_s14   ;;  %s460_s16 = sadd.s32 4294967294, %s767_s14   ;;  %s767_s14 = sphi %s801_s14, %s19_s14   ;;  %s763_s13 = sphi %s799_s13, %s1050_s13   ;;  %s759_s12 = sphi %s797_s12, %s1049_s12   ;;  %s755_s11 = sphi %s795_s11, %s1048_s11   ;;  %s751_s10 = sphi %s793_s10, %s1047_s10   ;;  %s747_s9 = sphi %s791_s9, %s1046_s9  }
   0x8   : > { %p53_p0 = scmp.ne.s32.totalorder %s751_s10, %s747_s9  ;;  %p825_p1 = scmp.eq.s32.totalorder %s459_s15, 0 }
   0x9   : > { %p829_p2 = scmp.eq.s32.totalorder %s459_s15, 1  ;;  %p106_p3 = scmp.eq.s32.totalorder %s460_s16, 1 }
   0xa   : > { %s1031_s17 = scalar_select %p825_p1, 1, 0 }
   0xb   : > { %s1032_s18 = scalar_select %p829_p2, 1, 0 }
   0xc   : > { %p835_p4 = por %p825_p1, %p53_p0  ;;  %p461_p5 = scmp.ge.s32.totalorder %s767_s14, 1 }
   0xd   : > { %p840_p6 = por %p106_p3, %p53_p0  ;;  %p113_p7 = scmp.lt.s32.totalorder %s767_s14, 3 }
   0xe   : > { %s1033_s19 = scalar_select %p835_p4, 1, 0 }
   0xf   : > { %s1034_s20 = scalar_select %p840_p6, 1, 0 }
  0x10   : > { %p845_p8 = pnand %p461_p5, %p113_p7  ;;  %s769_s22 = smov [#allocation5]  }
  0x11   : > { %s125_s23 = sshll.u32 %s769_s22, 4  ;;  %s31_s25 = sadd.s32 1, %s763_s13  ;;  %s126_s23 = int_to_ptr.vmem [resolvable:$true] %s125_s23 }
  0x12   : > { %s1035_s21 = scalar_select %p845_p8, 1, 0 }
  0x13   : > { %p553_p9 = pneg %p845_p8  ;;  %s623_s28 = scalar_lea.hbm %s1025_s1, 8192 }
  0x14   : > { %p624_p12 = scmp.ne.s32.totalorder %s1025_s1, %s623_s28  ;;  %p630_p5 = scmp.lt.u32.totalorder %s623_s28, %s1025_s1 }
  0x15   : > { %p854_p11 = pnand %p553_p9, %p825_p1 }
  0x17   : > { %p625_p13 = pneg %p854_p11 }
  0x19   : > { %p626_p0 = pnand %p625_p13, %p624_p12 }
  0x1b   : > { %p627_p3 = pneg %p626_p0 }
  0x1d   : > { %p632_p7 = pnand %p630_p5, %p627_p3 }
  0x1f   : > { %635 = shalt.err (!%p632_p7)
}
  0x20   : > { %s636_s5 = scalar_lea.vmem %s126_s23, 8192  ;;  %p644_p1 = scmp.lt.s32.totalorder %s126_s23, %s126_s23 }
  0x21   : > { %p637_p9 = scmp.ne.s32.totalorder %s126_s23, %s636_s5  ;;  %p645_p4 = scmp.lt.s32.totalorder %s636_s5, %s636_s5 }
  0x23   : > { %p639_p10 = pnand %p637_p9, %p625_p13  ;;  %p646_p8 = por %p645_p4, %p644_p1 }
  0x25   : > { %p640_p6 = pneg %p639_p10 }
  0x27   : > { %p647_p2 = pnand %p646_p8, %p640_p6 }
  0x29   : > { %650 = shalt.err (!%p647_p2)
}
  0x2a   : > { %s770_s6 = smov 256   ;;  %s771_s7 = smov 16  }
  0x2b   : > { %556 = dma.hbm_to_vmem [thread:$0]  (!%p854_p11), %s1025_s1, 8192, %s126_s23, [#allocation6], %s770_s6, %s770_s6, %s771_s7  }
  0x2c   : > { %p33_p1 = scmp.ge.s32.totalorder %s31_s25, 2  ;;  %s40_s16 = sadd.s32 1, %s755_s11 }
  0x2d   : > { %p47_p2 = scmp.ne.s32.totalorder %s755_s11, %s751_s10  ;;  %p48_p4 = scmp.eq.s32.totalorder %s767_s14, 0 }
  0x2e   : > { %s1052_s25 = smov (%p33_p1, %s31_s25), 0  ;;  %p1038_p8 = scmp.ne.s32.totalorder %s1032_s18, 0 }
  0x2f   : > { %p881_p6 = por %p48_p4, %p47_p2  ;;  %s35_s24 = ssub.s32 %s763_s13, %s1052_s25 }
  0x30   : > { %p887_p10 = por %p1038_p8, %p47_p2  ;;  %p566_p12 = scmp.lt.s32.totalorder %s767_s14, 2 }
  0x31   : > { %p38_p11 = scmp.eq.s32.totalorder %s35_s24, 0  ;;  %s139_s23 = sand.u32 1, %s755_s11  }
  0x32   : > { %s464_s27 = sshll.u32 %s139_s23, 3  ;;  %s479_s29 = sshll.u32 %s763_s13, 7 }
  0x33   : > { %s896_s28 = scalar_select %p38_p11, %s755_s11, %s40_s16  }
  0x34   : > { %s902_s4 = scalar_lea.hbm %s1024_s0, %s479_s29  ;;  %s143_s18 = scalar_lea.vmem [#allocation2], %s464_s27 }
  0x35   : > { %s153_s5 = sshll.u32 %s143_s18, 4  ;;  %p908_p13 = pnand %p566_p12, %p881_p6  ;;  %s904_s5 = int_to_ptr.vmem [resolvable:$true] %s153_s5 }
  0x36   : > { %s140_s7 = scalar_lea.sflag [#allocation3], %s139_s23  ;;  %s651_s8 = scalar_lea.hbm %s902_s4, 128 }
  0x37   : > { %p652_p0 = scmp.ne.s32.totalorder %s902_s4, %s651_s8  ;;  %p653_p3 = pneg %p908_p13 }
  0x38   : > { %s656_s24 = scalar_lea.hbm %s1024_s0, 256  ;;  %p657_p9 = scmp.lt.u32.totalorder %s902_s4, %s1024_s0 }
  0x39   : > { %p654_p5 = pnand %p653_p3, %p652_p0  ;;  %p658_p1 = scmp.lt.u32.totalorder %s656_s24, %s651_s8 }
  0x3a   : > { %p660_p4 = scmp.lt.u32.totalorder %s651_s8, %s902_s4 }
  0x3b   : > { %p655_p7 = pneg %p654_p5  ;;  %p659_p2 = por %p658_p1, %p657_p9 }
  0x3d   : > { %p661_p6 = por %p660_p4, %p659_p2 }
  0x3f   : > { %p662_p8 = pnand %p661_p6, %p655_p7 }
  0x41   : > { %665 = shalt.err (!%p662_p8)
}
  0x42   : > { %s666_s23 = scalar_lea.vmem %s904_s5, 128  ;;  %s772_s29 = smov [#allocation2]  }
  0x43   : > { %p667_p12 = scmp.ne.s32.totalorder %s904_s5, %s666_s23  ;;  %s671_s30 = sshll.u32 %s772_s29, 4  ;;  %s672_s30 = int_to_ptr.vmem [resolvable:$false] %s671_s30 }
  0x44   : > { %s673_s3 = scalar_lea.vmem %s672_s30, 256  ;;  %p674_p5 = scmp.lt.s32.totalorder %s904_s5, %s672_s30 }
  0x45   : > { %p669_p11 = pnand %p667_p12, %p653_p3  ;;  %p675_p9 = scmp.lt.s32.totalorder %s673_s3, %s666_s23 }
  0x47   : > { %p670_p0 = pneg %p669_p11  ;;  %p676_p1 = por %p675_p9, %p674_p5 }
  0x49   : > { %p677_p2 = pnand %p676_p1, %p670_p0 }
  0x4b   : > { %680 = shalt.err (!%p677_p2)
}
  0x4c   : > { %560 = dma.hbm_to_vmem [thread:$0]  (!%p908_p13), %s902_s4, 128, %s904_s5, %s140_s7  }
  0x4d   : > { %p1041_p7 = scmp.ne.s32.totalorder %s1035_s21, 0 }
  0x4e   : > { %s940_s18 = sand.u32 (!%p1041_p7), 1, %s751_s10   ;;  %p1042_p3 = scmp.ne.s32.totalorder (!%p1041_p7), %s1033_s19, 0 }
  0x4f   : > { %162 = sbr.rel (%p1041_p7) target bundleno = 503 (0x1f7), region = 28  ;;  %s468_s8 = sshll.u32 (!%p1041_p7), %s940_s18, 3 }
  0x50   : > { %s165_s15 = scalar_lea.sflag (!%p1041_p7), [#allocation3], %s940_s18  ;;  %s944_s16 = scalar_lea.vmem (!%p1041_p7), [#allocation2], %s468_s8 }
  0x56   : > { %734 = dma.done.wait (%p1042_p3), %s165_s15, 128  }
  0x57   : > { %736 = vsyncadd (%p1042_p3), %s165_s15, 4294967168  ;;  %p1043_p13 = scmp.ne.s32.totalorder %s1031_s17, 0 }
  0x59   : > { %738 = dma.done.wait (%p1043_p13), [#allocation6], 8192  }
  0x5a   : > { %740 = vsyncadd (%p1043_p13), [#allocation6], 4294959104  ;;  %v195_v0 = vld [vmem:[#allocation5 + $0x8] sm:$0xff]  ;;  %v197_v1 = vld [vmem:[#allocation5 + $0x18] sm:$0xff]  ;;  %s470_s17 = sshll.u32 %s940_s18, 4  ;;  %vm332_vm0 = vcmask 519168  }
  0x5b   : > { %v194_v2 = vld [vmem:[#allocation5] sm:$0xff]  ;;  %v481_v3 = vpack.c.bf16 %v197_v1, %v195_v0  ;;  %v196_v4 = vld [vmem:[#allocation5 + $0x10] sm:$0xff]  ;;  %v199_v5 = vld [vmem:[#allocation5 + $0x28] sm:$0xff]  ;;  %s192_s19 = scalar_lea.vmem [#allocation7], %s470_s17  ;;  %s773_s21 = smov 64  }
  0x5c   : > { %v201_v6 = vld [vmem:[#allocation5 + $0x38] sm:$0xff]  ;;  %v483_v7 = vpack.c.bf16 %v196_v4, %v194_v2  ;;  %v198_v9 = vld [vmem:[#allocation5 + $0x20] sm:$0xff]  ;;  %v200_v10 = vld [vmem:[#allocation5 + $0x30] sm:$0xff]  ;;  %s363_s4 = sshll.u32 %s192_s19, 4  ;;  %s480_s5 = sshll.u32 %s759_s12, 8  ;;  %s967_s4 = int_to_ptr.vmem [resolvable:$true] %s363_s4 }
  0x5d   : > { %v485_v8 = vpack.c.bf16 %v201_v6, %v199_v5  ;;  %v203_v11 = vld [vmem:[#allocation5 + $0x48] sm:$0xff]  ;;  %482 = vmatprep.subr.bf16.mxu0 %v481_v3  ;;  %v205_v12 = vld [vmem:[#allocation5 + $0x58] sm:$0xff]  ;;  %v487_v13 = vpack.c.bf16 %v200_v10, %v198_v9  ;;  %v202_v15 = vld [vmem:[#allocation5 + $0x40] sm:$0xff]  ;;  %s972_s24 = scalar_lea.hbm %s1026_s2, %s480_s5  ;;  %s349_s22 = scalar_lea.sflag [#allocation4], %s940_s18 }
  0x5e   : > { %484 = vmatpush1.bf16.msra.mxu0 %v483_v7  ;;  %v489_v14 = vpack.c.bf16 %v205_v12, %v203_v11  ;;  %v204_v16 = vld [vmem:[#allocation5 + $0x50] sm:$0xff]  ;;  %v207_v17 = vld [vmem:[#allocation5 + $0x68] sm:$0xff]  ;;  %v209_v18 = vld [vmem:[#allocation5 + $0x78] sm:$0xff]  ;;  %s681_s27 = scalar_lea.vmem %s967_s4, 256  ;;  %s774_s12 = smov [#allocation7]  }
  0x5f   : > { %486 = vmatprep.subr.bf16.mxu0 %v485_v8  ;;  %v491_v19 = vpack.c.bf16 %v204_v16, %v202_v15  ;;  %v493_v20 = vpack.c.bf16 %v209_v18, %v207_v17  ;;  %v206_v21 = vld [vmem:[#allocation5 + $0x60] sm:$0xff]  ;;  %v208_v22 = vld [vmem:[#allocation5 + $0x70] sm:$0xff]  ;;  %v211_v23 = vld [vmem:[#allocation5 + $0x88] sm:$0xff]  ;;  %p682_p4 = scmp.ne.s32.totalorder %s967_s4, %s681_s27  ;;  %s685_s23 = sshll.u32 %s774_s12, 4  ;;  %s686_s23 = int_to_ptr.vmem [resolvable:$false] %s685_s23 }
  0x60   : > { %v213_v24 = vld [vmem:[#allocation5 + $0x98] sm:$0xff]  ;;  %v495_v25 = vpack.c.bf16 %v208_v22, %v206_v21  ;;  %v210_v27 = vld [vmem:[#allocation5 + $0x80] sm:$0xff]  ;;  %v212_v28 = vld [vmem:[#allocation5 + $0x90] sm:$0xff]  ;;  %s687_s29 = scalar_lea.vmem %s686_s23, 512  ;;  %p688_p12 = scmp.lt.s32.totalorder %s967_s4, %s686_s23 }
  0x61   : > { %v497_v26 = vpack.c.bf16 %v213_v24, %v211_v23  ;;  %v215_v29 = vld [vmem:[#allocation5 + $0xa8] sm:$0xff]  ;;  %v217_v30 = vld [vmem:[#allocation5 + $0xb8] sm:$0xff]  ;;  %v499_v31 = vpack.c.bf16 %v212_v28, %v210_v27  ;;  %v214_v33 = vld [vmem:[#allocation5 + $0xa0] sm:$0xff]  ;;  %p683_p6 = pnand %p682_p4, %p887_p10  ;;  %p689_p11 = scmp.lt.s32.totalorder %s687_s29, %s681_s27 }
  0x62   : > { %488 = vmatpush1.bf16.msra.mxu0 %v487_v13  ;;  %v501_v32 = vpack.c.bf16 %v217_v30, %v215_v29  ;;  %v216_v34 = vld [vmem:[#allocation5 + $0xb0] sm:$0xff]  ;;  %v219_v35 = vld [vmem:[#allocation5 + $0xc8] sm:$0xff]  ;;  %v221_v36 = vld [vmem:[#allocation5 + $0xd8] sm:$0xff] }
  0x63   : > { %490 = vmatprep.subr.bf16.mxu0 %v489_v14  ;;  %v503_v37 = vpack.c.bf16 %v216_v34, %v214_v33  ;;  %v505_v38 = vpack.c.bf16 %v221_v36, %v219_v35  ;;  %v218_v39 = vld [vmem:[#allocation5 + $0xc0] sm:$0xff]  ;;  %v220_v40 = vld [vmem:[#allocation5 + $0xd0] sm:$0xff]  ;;  %v223_v42 = vld [vmem:[#allocation5 + $0xe8] sm:$0xff]  ;;  %p684_p8 = pneg %p683_p6  ;;  %p690_p0 = por %p689_p11, %p688_p12 }
  0x64   : > { %v955_v41 = vld [vmem:[%s944_s16] sm:$0xff]  ;;  %v507_v45 = vpack.c.bf16 %v220_v40, %v218_v39  ;;  %v222_v47 = vld [vmem:[#allocation5 + $0xe0] sm:$0xff]  ;;  %v227_v49 = vld [vmem:[#allocation5 + $0x108] sm:$0xff] }
  0x65   : > { %v225_v43 = vld [vmem:[#allocation5 + $0xf8] sm:$0xff]  ;;  %v259_v44 = vcombine.high %v955_v41, %v955_v41  ;;  %v224_v48 = vld [vmem:[#allocation5 + $0xf0] sm:$0xff]  ;;  %v226_v53 = vld [vmem:[#allocation5 + $0x100] sm:$0xff]  ;;  %p691_p5 = pnand %p690_p0, %p684_p8 }
  0x66   : > { %492 = vmatpush1.bf16.msra.mxu0 %v491_v19  ;;  %v509_v46 = vpack.c.bf16 %v225_v43, %v223_v42  ;;  %v229_v50 = vld [vmem:[#allocation5 + $0x118] sm:$0xff]  ;;  %v511_v51 = vpack.c.bf16 %v224_v48, %v222_v47  ;;  %v228_v54 = vld [vmem:[#allocation5 + $0x110] sm:$0xff]  ;;  %v231_v55 = vld [vmem:[#allocation5 + $0x128] sm:$0xff] }
  0x67   : > { %494 = vmatprep.subr.bf16.mxu0 %v493_v20  ;;  %325 = vmatprep.mubr.f32.mxu0 %v259_v44  ;;  %v513_v52 = vpack.c.bf16 %v229_v50, %v227_v49  ;;  %v233_v56 = vld [vmem:[#allocation5 + $0x138] sm:$0xff]  ;;  %v515_v57 = vpack.c.bf16 %v228_v54, %v226_v53  ;;  %v230_v59 = vld [vmem:[#allocation5 + $0x120] sm:$0xff]  ;;  %v232_v60 = vld [vmem:[#allocation5 + $0x130] sm:$0xff] }
  0x68   : > { %v517_v58 = vpack.c.bf16 %v233_v56, %v231_v55  ;;  %v235_v61 = vld [vmem:[#allocation5 + $0x148] sm:$0xff]  ;;  %v237_v62 = vld [vmem:[#allocation5 + $0x158] sm:$0xff]  ;;  %v519_v63 = vpack.c.bf16 %v232_v60, %v230_v59  ;;  %v234_v1 = vld [vmem:[#allocation5 + $0x140] sm:$0xff] }
  0x69   : > { %v521_v0 = vpack.c.bf16 %v237_v62, %v235_v61  ;;  %v236_v2 = vld [vmem:[#allocation5 + $0x150] sm:$0xff]  ;;  %v239_v3 = vld [vmem:[#allocation5 + $0x168] sm:$0xff]  ;;  %v241_v4 = vld [vmem:[#allocation5 + $0x178] sm:$0xff] }
  0x6a   : > { %496 = vmatpush1.bf16.msra.mxu0 %v495_v25  ;;  %v523_v5 = vpack.c.bf16 %v236_v2, %v234_v1  ;;  %v525_v6 = vpack.c.bf16 %v241_v4, %v239_v3  ;;  %v238_v7 = vld [vmem:[#allocation5 + $0x160] sm:$0xff]  ;;  %v240_v8 = vld [vmem:[#allocation5 + $0x170] sm:$0xff]  ;;  %v243_v9 = vld [vmem:[#allocation5 + $0x188] sm:$0xff] }
  0x6b   : > { %498 = vmatprep.subr.bf16.mxu0 %v497_v26  ;;  %v245_v10 = vld [vmem:[#allocation5 + $0x198] sm:$0xff]  ;;  %v527_v11 = vpack.c.bf16 %v240_v8, %v238_v7  ;;  %v242_v13 = vld [vmem:[#allocation5 + $0x180] sm:$0xff]  ;;  %v244_v14 = vld [vmem:[#allocation5 + $0x190] sm:$0xff] }
  0x6c   : > { %v529_v12 = vpack.c.bf16 %v245_v10, %v243_v9  ;;  %v247_v15 = vld [vmem:[#allocation5 + $0x1a8] sm:$0xff]  ;;  %v249_v16 = vld [vmem:[#allocation5 + $0x1b8] sm:$0xff]  ;;  %v531_v17 = vpack.c.bf16 %v244_v14, %v242_v13  ;;  %v246_v19 = vld [vmem:[#allocation5 + $0x1a0] sm:$0xff] }
  0x6d   : > { %v533_v18 = vpack.c.bf16 %v249_v16, %v247_v15  ;;  %v248_v20 = vld [vmem:[#allocation5 + $0x1b0] sm:$0xff]  ;;  %v251_v21 = vld [vmem:[#allocation5 + $0x1c8] sm:$0xff]  ;;  %v253_v22 = vld [vmem:[#allocation5 + $0x1d8] sm:$0xff] }
  0x6e   : > { %500 = vmatpush1.bf16.msra.mxu0 %v499_v31  ;;  %v535_v23 = vpack.c.bf16 %v248_v20, %v246_v19  ;;  %v537_v24 = vpack.c.bf16 %v253_v22, %v251_v21  ;;  %v250_v25 = vld [vmem:[#allocation5 + $0x1c0] sm:$0xff]  ;;  %v252_v26 = vld [vmem:[#allocation5 + $0x1d0] sm:$0xff]  ;;  %v255_v27 = vld [vmem:[#allocation5 + $0x1e8] sm:$0xff] }
  0x6f   : > { %502 = vmatprep.subr.bf16.mxu0 %v501_v32  ;;  %v257_v28 = vld [vmem:[#allocation5 + $0x1f8] sm:$0xff]  ;;  %v539_v29 = vpack.c.bf16 %v252_v26, %v250_v25  ;;  %v254_v31 = vld [vmem:[#allocation5 + $0x1e0] sm:$0xff]  ;;  %v256_v32 = vld [vmem:[#allocation5 + $0x1f0] sm:$0xff] }
  0x70   : > { %v541_v30 = vpack.c.bf16 %v257_v28, %v255_v27  ;;  %v543_v33 = vpack.c.bf16 %v256_v32, %v254_v31 }
  0x72   : > { %504 = vmatpush1.bf16.msra.mxu0 %v503_v37 }
  0x73   : > { %506 = vmatprep.subr.bf16.mxu0 %v505_v38 }
  0x76   : > { %508 = vmatpush1.bf16.msra.mxu0 %v507_v45 }
  0x77   : > { %510 = vmatprep.subr.bf16.mxu0 %v509_v46 }
  0x7a   : > { %512 = vmatpush1.bf16.msra.mxu0 %v511_v51 }
  0x7b   : > { %514 = vmatprep.subr.bf16.mxu0 %v513_v52 }
  0x7e   : > { %516 = vmatpush1.bf16.msra.mxu0 %v515_v57 }
  0x7f   : > { %518 = vmatprep.subr.bf16.mxu0 %v517_v58 }
  0x82   : > { %520 = vmatpush1.bf16.msra.mxu0 %v519_v63 }
  0x83   : > { %522 = vmatprep.subr.bf16.mxu0 %v521_v0 }
  0x86   : > { %524 = vmatpush1.bf16.msra.mxu0 %v523_v5 }
  0x87   : > { %526 = vmatprep.subr.bf16.mxu0 %v525_v6 }
  0x8a   : > { %528 = vmatpush1.bf16.msra.mxu0 %v527_v11 }
  0x8b   : > { %530 = vmatprep.subr.bf16.mxu0 %v529_v12 }
  0x8e   : > { %532 = vmatpush1.bf16.msra.mxu0 %v531_v17 }
  0x8f   : > { %534 = vmatprep.subr.bf16.mxu0 %v533_v18 }
  0x92   : > { %536 = vmatpush1.bf16.msra.mxu0 %v535_v23 }
  0x93   : > { %538 = vmatprep.subr.bf16.mxu0 %v537_v24 }
  0x96   : > { %540 = vmatpush1.bf16.msra.mxu0 %v539_v29 }
  0x97   : > { %542 = vmatprep.subr.bf16.mxu0 %v541_v30 }
  0x9a   : > { %544 = vmatpush1.bf16.msra.mxu0 %v543_v33 }
  0x9d   : > { %326 = vmatmul.mubr.f32.vlgmr.msra.gmra.mrb[0].mxu0 %v955_v41 }
 0x170   : > { %v327_v34 = vpop.f32.mrb[0].mxu0 }
 0x171   : > { %333 = vst.msk [vmem:[%s192_s19] sm:$0xf] %vm332_vm0, %v327_v34  ;;  %335 = vrot.lane.b32.xlu0 %v327_v34, %s773_s21  ;;  %v329_v35 = vpop.f32.mrb[1].mxu0 }
 0x172   : > { %472 = vst.msk [vmem:[%s192_s19 + $0x8] sm:$0xf] %vm332_vm0, %v329_v35 }
 0x175   : > { %343 = vrot.lane.b32.xlu0 %v329_v35, %s773_s21 }
 0x1e3   : > { %v336_v36 = vpop.permute.xlu0 %335 }
 0x1e4   : > { %471 = vst.msk [vmem:[%s192_s19 + $0x4] sm:$0xf] %vm332_vm0, %v336_v36 }
 0x1e7   : > { %v344_v37 = vpop.permute.xlu0 %343 }
 0x1e8   : > { %473 = vst.msk [vmem:[%s192_s19 + $0xc] sm:$0xf] %vm332_vm0, %v344_v37 }
 0x1e9   : > { %694 = shalt.err (!%p691_p5)
}
 0x1ea   : > { %s695_s30 = scalar_lea.hbm %s972_s24, 256  ;;  %s699_s15 = scalar_lea.hbm %s1026_s2, 512 }
 0x1eb   : > { %p696_p9 = scmp.ne.s32.totalorder %s972_s24, %s695_s30  ;;  %p700_p7 = scmp.lt.u32.totalorder %s972_s24, %s1026_s2 }
 0x1ec   : > { %p701_p3 = scmp.lt.u32.totalorder %s699_s15, %s695_s30  ;;  %p703_p4 = scmp.lt.u32.totalorder %s695_s30, %s972_s24 }
 0x1ed   : > { %p697_p1 = pnand %p696_p9, %p887_p10 }
 0x1ee   : > { %p702_p13 = por %p701_p3, %p700_p7 }
 0x1ef   : > { %p698_p2 = pneg %p697_p1 }
 0x1f0   : > { %p704_p6 = por %p703_p4, %p702_p13 }
 0x1f2   : > { %p705_p8 = pnand %p704_p6, %p698_p2 }
 0x1f4   : > { %708 = shalt.err (!%p705_p8)
}
 0x1f5   : > { %s775_s19 = smov 4  }
 0x1f6   : > { %551 = dma.vmem_to_hbm [thread:$0]  (%p887_p10), %s967_s4, 256, %s972_s24, %s349_s22, %s773_s21, %s773_s21, %s775_s19  }
 0x1f7 PF: > { %s378_s5 = sand.u32 1, %s747_s9   ;;  %p1044_p12 = scmp.ne.s32.totalorder %s1034_s20, 0 }
 0x1f8   : > { %p1045_p11 = scmp.ge.s32.totalorder %s767_s14, 2  ;;  %s379_s6 = scalar_lea.sflag [#allocation4], %s378_s5 }
 0x1fa   : > { %p562_p0 = pnand %p1045_p11, %p1044_p12 }
 0x1fc   : > { %742 = dma.done.wait (!%p562_p0), %s379_s6, 256  }
 0x1fd   : > { %744 = vsyncadd (!%p562_p0), %s379_s6, 4294967040  ;;  %s19_s14 = sadd.s32 1, %s767_s14   ;;  %s1046_s9 = smov %s751_s10 }
 0x1fe   : > { %p16_p5 = scmp.ge.s32.totalorder %s19_s14, 4   ;;  %s1047_s10 = smov %s755_s11 }
 0x1ff   : > { %s1048_s11 = smov %s896_s28  ;;  %s1049_s12 = smov %s763_s13 }
 0x200   : > { %s1050_s13 = smov %s1052_s25  ;;  %18 = sbr.rel (!%p16_p5) target bundleno = 7 (0x7), region = 80 }
 0x207   :  { %384 = vsyncpa [#allocation3], 1 }
 0x208   :  { %386 = vsyncpa [#allocation3 + $0x1], 1 }
 0x209   :  { %387 = vsyncpa [#allocation6], 1 }
 0x20a   :  { %388 = vsyncpa [#allocation4], 1 }
 0x20b   :  { %390 = vsyncpa [#allocation4 + $0x1], 1 }

</bundles_post_ra>
